<compile_context>
chip_gen: v6e
topology: v6e:2x2x1
jax: 0.10.0
libtpu: 0.0.40
codegen_flags: <defaults>
</compile_context>

<pallas_src>
import functools

import jax
import jax.numpy as jnp
from jax import lax
from jax.experimental import pallas as pl
from jax.experimental.pallas import tpu as pltpu

EPS = 1e-6
MASK_VALUE = -1e30


@functools.lru_cache(maxsize=None)
def _vmem_limit_bytes():
    cap = 128 * 1024 * 1024
    try:
        info = pltpu.get_tpu_info()
        cap = int(getattr(info, "vmem_capacity_bytes", cap))
    except Exception:
        pass
    # Leave ~25% headroom for compiler scratch / semaphores / double buffering:
    # ~96 MiB on v5e/v6e (128 MiB physical), ~48 MiB on v7x (64 MiB physical).
    return (cap * 3) // 4


def _params(dimension_semantics):
    return pltpu.CompilerParams(dimension_semantics=dimension_semantics,
                                vmem_limit_bytes=_vmem_limit_bytes())


def _pick_m_tile(n, pref=256):
    for t in (pref, 256, 128, 64, 32, 16, 8):
        if n % t == 0:
            return t
    return n


def _pick_hidden_tile(n):
    for t in (512, 256, 128):
        if n % t == 0:
            return t
    return n


def _layernorm_f32(h, gamma, beta):
    mean = jnp.mean(h, axis=-1, keepdims=True)
    var = jnp.mean(jnp.square(h - mean), axis=-1, keepdims=True)
    return (h - mean) * lax.rsqrt(var + EPS) * gamma + beta


def _rotate_half(x):
    # TODO(synk): use pltpu.roll(x, D//2, axis=-1) * sign_vec (XLU slot) when
    # head_dim is a multiple of 128; concat fallback kept for small head_dim.
    d = x.shape[-1]
    return jnp.concatenate([-x[:, d // 2:], x[:, :d // 2]], axis=-1)


# --------------------------------------------------------------------------
# 1. (residual add) + LayerNorm1 + QKV projection + RoPE (Q pre-scaled)
# --------------------------------------------------------------------------
def _ln_qkv_rope_kernel(*refs, add_residual, dim, num_heads, scale):
    if add_residual:
        (x_ref, res_ref, g_ref, b_ref, wqkv_ref, bqkv_ref, cos_ref, sin_ref,
         r_ref, q_ref, k_ref, v_ref) = refs
        h = x_ref[...].astype(jnp.float32) + res_ref[...].astype(jnp.float32)
        r_ref[...] = h.astype(r_ref.dtype)
    else:
        (x_ref, g_ref, b_ref, wqkv_ref, bqkv_ref, cos_ref, sin_ref,
         q_ref, k_ref, v_ref) = refs
        h = x_ref[...].astype(jnp.float32)

    normed = _layernorm_f32(h, g_ref[...].astype(jnp.float32),
                            b_ref[...].astype(jnp.float32))
    # TODO(synk): for real Qwen2-VL sizes on v7x, tile wqkv over the 3*dim
    # output axis (or store it in bf16) instead of keeping it fully resident.
    qkv = jnp.dot(normed.astype(wqkv_ref.dtype), wqkv_ref[...],
                  preferred_element_type=jnp.float32)
    qkv = qkv + bqkv_ref[...].astype(jnp.float32)

    cos = cos_ref[...].astype(jnp.float32)           # (tm, D)
    sin = sin_ref[...].astype(jnp.float32)
    head_dim = dim // num_heads

    v_ref[...] = qkv[:, 2 * dim:].astype(v_ref.dtype)
    for hh in range(num_heads):                      # static unroll over heads
        lo = hh * head_dim
        qh = qkv[:, lo:lo + head_dim]
        kh = qkv[:, dim + lo:dim + lo + head_dim]
        qh = (qh * cos + _rotate_half(qh) * sin) * scale   # scale folded into q
        kh = kh * cos + _rotate_half(kh) * sin
        q_ref[:, lo:lo + head_dim] = qh.astype(q_ref.dtype)
        k_ref[:, lo:lo + head_dim] = kh.astype(k_ref.dtype)


def ln_qkv_rope(x, residual, gamma, beta, wqkv, bqkv, cos, sin, *,
                num_heads, block_m=None):
    S, dim = x.shape
    head_dim = dim // num_heads
    tm = block_m or _pick_m_tile(S)
    assert S % tm == 0
    add = residual is not None
    kernel = functools.partial(_ln_qkv_rope_kernel, add_residual=add, dim=dim,
                               num_heads=num_heads,
                               scale=float(head_dim) ** -0.5)

    row = pl.BlockSpec((tm, dim), lambda i: (i, 0))
    rope_row = pl.BlockSpec((tm, head_dim), lambda i: (i, 0))

    def const(shape):
        return pl.BlockSpec(shape, lambda i: (0, 0))

    in_specs = [row] + ([row] if add else []) + [
        const((1, dim)), const((1, dim)),
        const((dim, 3 * dim)), const((1, 3 * dim)),
        rope_row, rope_row]
    args = [x] + ([residual] if add else []) + [
        gamma.reshape(1, dim), beta.reshape(1, dim),
        wqkv, bqkv.reshape(1, 3 * dim), cos, sin]

    sds = jax.ShapeDtypeStruct((S, dim), x.dtype)
    n_out = 4 if add else 3
    outs = pl.pallas_call(
        kernel,
        grid=(S // tm,),
        in_specs=in_specs,
        out_specs=(row,) * n_out,
        out_shape=(sds,) * n_out,
        compiler_params=_params(("parallel",)),
    )(*args)

    if add:
        r, q, k, v = outs
    else:
        q, k, v = outs
        r = x   # residual is the (unmodified) input; no extra copy needed
    return q, k, v, r


# --------------------------------------------------------------------------
# 2. flash-style segment-masked attention (lane-dense in/out, per-head loop)
# --------------------------------------------------------------------------
def _attn_kernel(kfirst_ref, klast_ref,
                 q_ref, k_ref, v_ref, segq_ref, segk_ref,
                 o_ref, m_sc, l_sc, acc_sc, *, num_heads, head_dim):
    qi = pl.program_id(0)
    ki = pl.program_id(1)

    @pl.when(ki == 0)
    def _init():
        m_sc[...] = jnp.full(m_sc.shape, MASK_VALUE, jnp.float32)
        l_sc[...] = jnp.zeros(l_sc.shape, jnp.float32)
        acc_sc[...] = jnp.zeros(acc_sc.shape, jnp.float32)

    # kv tiles outside [kfirst, klast] cannot intersect this q tile's segments
    in_range = jnp.logical_and(ki >= kfirst_ref[qi], ki <= klast_ref[qi])

    @pl.when(in_range)
    def _update():
        segq = segq_ref[...]                              # (tq, 1)
        segk = segk_ref[...]                              # (tk, 1)
        mask = segq == jnp.transpose(segk)                # (tq, tk)
        for h in range(num_heads):                        # static unroll
            lo = h * head_dim
            qh = q_ref[:, lo:lo + head_dim]               # (tq, D)  pre-rotated*scaled
            kh = k_ref[:, lo:lo + head_dim]               # (tk, D)  pre-rotated
            s = lax.dot_general(qh, kh,
                                dimension_numbers=(((1,), (1,)), ((), ())),
                                preferred_element_type=jnp.float32)  # (tq, tk)
            s = jnp.where(mask, s, MASK_VALUE)

            m_prev = m_sc[h]                              # (tq, 1)
            m_new = jnp.maximum(m_prev, jnp.max(s, axis=-1, keepdims=True))
            alpha = jnp.exp(m_prev - m_new)
            p = jnp.exp(s - m_new)
            p = jnp.where(mask, p, 0.0)                   # robust to all-masked tiles
            l_sc[h] = alpha * l_sc[h] + jnp.sum(p, axis=-1, keepdims=True)
            vh = v_ref[:, lo:lo + head_dim]               # (tk, D)
            pv = jnp.dot(p.astype(vh.dtype), vh,
                         preferred_element_type=jnp.float32)          # (tq, D)
            acc_sc[:, lo:lo + head_dim] = alpha * acc_sc[:, lo:lo + head_dim] + pv
            m_sc[h] = m_new

    @pl.when(ki == pl.num_programs(1) - 1)
    def _finalize():
        # TODO(synk): optionally fuse the out-projection here (proj weight
        # resident in VMEM) to drop one (S, dim) HBM round trip.
        for h in range(num_heads):
            lo = h * head_dim
            o_ref[:, lo:lo + head_dim] = (
                acc_sc[:, lo:lo + head_dim] / l_sc[h]).astype(o_ref.dtype)


def attention(q, k, v, seg, *, num_heads, block_q=None, block_kv=None):
    S, dim = q.shape
    head_dim = dim // num_heads
    tq = block_q or _pick_m_tile(S, 128)
    tk = block_kv or _pick_m_tile(S, 128)
    assert S % tq == 0 and S % tk == 0
    nq, nk = S // tq, S // tk

    seg = seg.astype(jnp.int32)
    q_lo, q_hi = seg[0::tq], seg[tq - 1::tq]
    k_lo, k_hi = seg[0::tk], seg[tk - 1::tk]
    # segments are contiguous -> overlapping kv tiles form a contiguous range
    overlap = (q_lo[:, None] <= k_hi[None, :]) & (k_lo[None, :] <= q_hi[:, None])
    kv_ids = jnp.arange(nk, dtype=jnp.int32)
    kfirst = jnp.clip(jnp.min(jnp.where(overlap, kv_ids[None, :], nk), axis=1),
                      0, nk - 1).astype(jnp.int32)
    klast = jnp.clip(jnp.max(jnp.where(overlap, kv_ids[None, :], -1), axis=1),
                     0, nk - 1).astype(jnp.int32)
    seg2d = seg.reshape(S, 1)

    kernel = functools.partial(_attn_kernel, num_heads=num_heads,
                               head_dim=head_dim)

    # Clip the kv block index to the needed range: outside the range the block
    # index is unchanged from a fetched one, so the DMA is skipped entirely.
    def kv_block(qi, ki, kf, kl):
        j = jnp.minimum(jnp.maximum(ki, kf[qi]), kl[qi])
        return (j, 0)

    q_spec = pl.BlockSpec((tq, dim), lambda qi, ki, kf, kl: (qi, 0))
    k_spec = pl.BlockSpec((tk, dim), kv_block)
    v_spec = pl.BlockSpec((tk, dim), kv_block)
    sq_spec = pl.BlockSpec((tq, 1), lambda qi, ki, kf, kl: (qi, 0))
    sk_spec = pl.BlockSpec((tk, 1), kv_block)
    o_spec = pl.BlockSpec((tq, dim), lambda qi, ki, kf, kl: (qi, 0))

    grid_spec = pltpu.PrefetchScalarGridSpec(
        num_scalar_prefetch=2,
        grid=(nq, nk),
        in_specs=[q_spec, k_spec, v_spec, sq_spec, sk_spec],
        out_specs=o_spec,
        scratch_shapes=[
            pltpu.VMEM((num_heads, tq, 1), jnp.float32),   # running max
            pltpu.VMEM((num_heads, tq, 1), jnp.float32),   # running sum
            pltpu.VMEM((tq, dim), jnp.float32),            # lane-dense accumulator
        ],
    )

    return pl.pallas_call(
        kernel,
        grid_spec=grid_spec,
        out_shape=jax.ShapeDtypeStruct((S, dim), q.dtype),
        compiler_params=_params(("parallel", "arbitrary")),
    )(kfirst, klast, q, k, v, seg2d, seg2d)


# --------------------------------------------------------------------------
# 3. out-projection + residual add + LayerNorm2 (fused)
# --------------------------------------------------------------------------
def _proj_ln_kernel(x_ref, res_ref, wp_ref, bp_ref, g_ref, b_ref, y_ref, r_ref):
    proj = jnp.dot(x_ref[...].astype(wp_ref.dtype), wp_ref[...],
                   preferred_element_type=jnp.float32)
    proj = proj + bp_ref[...].astype(jnp.float32)
    h = proj + res_ref[...].astype(jnp.float32)
    r_ref[...] = h.astype(r_ref.dtype)
    y_ref[...] = _layernorm_f32(h, g_ref[...].astype(jnp.float32),
                                b_ref[...].astype(jnp.float32)).astype(y_ref.dtype)


def proj_ln(x, residual, wp, bp, gamma, beta, *, block_m=None):
    S, dim = x.shape
    tm = block_m or _pick_m_tile(S)
    assert S % tm == 0
    row = pl.BlockSpec((tm, dim), lambda i: (i, 0))

    def const(shape):
        return pl.BlockSpec(shape, lambda i: (0, 0))

    sds = jax.ShapeDtypeStruct((S, dim), x.dtype)
    normed, resid = pl.pallas_call(
        _proj_ln_kernel,
        grid=(S // tm,),
        in_specs=[row, row, const((dim, dim)), const((1, dim)),
                  const((1, dim)), const((1, dim))],
        out_specs=(row, row),
        out_shape=(sds, sds),
        compiler_params=_params(("parallel",)),
    )(x, residual, wp, bp.reshape(1, dim), gamma.reshape(1, dim),
      beta.reshape(1, dim))
    return normed, resid


# --------------------------------------------------------------------------
# 4. MLP: fc1 + exact GELU + fc2, tiled over (seq, hidden) with f32 accumulator
# --------------------------------------------------------------------------
def _mlp_kernel(x_ref, w1_ref, b1_ref, w2_ref, b2_ref, o_ref, acc_ref):
    @pl.when(pl.program_id(1) == 0)
    def _():
        acc_ref[...] = jnp.zeros(acc_ref.shape, jnp.float32)

    t = jnp.dot(x_ref[...].astype(w1_ref.dtype), w1_ref[...],
                preferred_element_type=jnp.float32)
    t = t + b1_ref[...].astype(jnp.float32)
    t = jax.nn.gelu(t, approximate=False)          # exact GELU (nn.GELU())
    acc_ref[...] += jnp.dot(t.astype(w2_ref.dtype), w2_ref[...],
                            preferred_element_type=jnp.float32)

    @pl.when(pl.program_id(1) == pl.num_programs(1) - 1)
    def _():
        o_ref[...] = (acc_ref[...] + b2_ref[...].astype(jnp.float32)
                      ).astype(o_ref.dtype)


def mlp(x, w1, b1, w2, b2, *, block_m=None, block_h=None):
    # Weight traffic scales with S/tm; pick tm as large as VMEM allows.
    S, dim = x.shape
    hidden = w1.shape[1]
    tm = block_m or _pick_m_tile(S)
    th = block_h or _pick_hidden_tile(hidden)
    assert S % tm == 0 and hidden % th == 0
    return pl.pallas_call(
        _mlp_kernel,
        grid=(S // tm, hidden // th),
        in_specs=[
            pl.BlockSpec((tm, dim), lambda i, h: (i, 0)),
            pl.BlockSpec((dim, th), lambda i, h: (0, h)),
            pl.BlockSpec((1, th), lambda i, h: (0, h)),
            pl.BlockSpec((th, dim), lambda i, h: (h, 0)),
            pl.BlockSpec((1, dim), lambda i, h: (0, 0)),
        ],
        out_specs=pl.BlockSpec((tm, dim), lambda i, h: (i, 0)),
        out_shape=jax.ShapeDtypeStruct((S, dim), x.dtype),
        scratch_shapes=[pltpu.VMEM((tm, dim), jnp.float32)],
        compiler_params=_params(("parallel", "arbitrary")),
    )(x, w1, b1.reshape(1, hidden), w2, b2.reshape(1, dim))


# --------------------------------------------------------------------------
# Qwen2VLVisionBlock forward
# --------------------------------------------------------------------------
def qwen2vl_vision_block(params, hidden_states, cu_seqlens, rotary_pos_emb,
                         residual=None, *, block_m=None, block_q=None,
                         block_kv=None, block_h=None):
    cos, sin = rotary_pos_emb
    S, dim = hidden_states.shape
    H = params['num_heads']

    # norm1 (+ optional residual add) + QKV projection + RoPE, fused
    q, k, v, resid1 = ln_qkv_rope(hidden_states, residual,
                                  params['norm1_w'], params['norm1_b'],
                                  params['qkv_w'], params['qkv_b'],
                                  cos, sin, num_heads=H, block_m=block_m)

    # segment ids from cu_seqlens (variable-length batch -> block-diag mask)
    pos = jnp.arange(S, dtype=jnp.int32)
    seg = jnp.searchsorted(cu_seqlens[1:], pos, side='right').astype(jnp.int32)

    attn_out = attention(q, k, v, seg, num_heads=H,
                         block_q=block_q, block_kv=block_kv)     # (S, dim)

    # out-projection + residual add + norm2 fused
    normed2, resid2 = proj_ln(attn_out, resid1,
                              params['proj_w'], params['proj_b'],
                              params['norm2_w'], params['norm2_b'],
                              block_m=block_m)

    out = mlp(normed2, params['fc1_w'], params['fc1_b'],
              params['fc2_w'], params['fc2_b'],
              block_m=block_m, block_h=block_h)
    return out, resid2


# --------------------------------------------------------------------------
# Synthetic params / rotary, and a pure-JAX reference for validation
# --------------------------------------------------------------------------
def init_params(key, embed_dim, num_heads, mlp_ratio):
    hidden_dim = int(embed_dim * mlp_ratio)
    ks = jax.random.split(key, 12)
    s = 0.02
    f32 = jnp.float32
    return {
        'num_heads': num_heads,
        'norm1_w': 1.0 + s * jax.random.normal(ks[0], (embed_dim,), f32),
        'norm1_b': s * jax.random.normal(ks[1], (embed_dim,), f32),
        'norm2_w': 1.0 + s * jax.random.normal(ks[2], (embed_dim,), f32),
        'norm2_b': s * jax.random.normal(ks[3], (embed_dim,), f32),
        'qkv_w': s * jax.random.normal(ks[4], (embed_dim, 3 * embed_dim), f32),
        'qkv_b': s * jax.random.normal(ks[5], (3 * embed_dim,), f32),
        'proj_w': s * jax.random.normal(ks[6], (embed_dim, embed_dim), f32),
        'proj_b': s * jax.random.normal(ks[7], (embed_dim,), f32),
        'fc1_w': s * jax.random.normal(ks[8], (embed_dim, hidden_dim), f32),
        'fc1_b': s * jax.random.normal(ks[9], (hidden_dim,), f32),
        'fc2_w': s * jax.random.normal(ks[10], (hidden_dim, embed_dim), f32),
        'fc2_b': s * jax.random.normal(ks[11], (embed_dim,), f32),
    }


def make_rotary(seq, head_dim):
    half = head_dim // 2
    inv_freq = 1.0 / (10000.0 ** (jnp.arange(0, half, dtype=jnp.float32) / half))
    pos = jnp.arange(seq, dtype=jnp.float32)
    freqs = jnp.outer(pos, inv_freq)
    emb = jnp.concatenate([freqs, freqs], axis=-1)
    return jnp.cos(emb), jnp.sin(emb)


def reference_block(params, x, cu_seqlens, rope, residual=None):
    cos, sin = rope
    S, dim = x.shape
    H = params['num_heads']
    D = dim // H

    def ln(v, w, b):
        m = v.mean(-1, keepdims=True)
        var = ((v - m) ** 2).mean(-1, keepdims=True)
        return (v - m) / jnp.sqrt(var + EPS) * w + b

    if residual is None:
        residual = x
        h = x
    else:
        h = x + residual
        residual = h
    n1 = ln(h, params['norm1_w'], params['norm1_b'])
    qkv = n1 @ params['qkv_w'] + params['qkv_b']
    q, k, v = jnp.split(qkv, 3, axis=-1)
    q = q.reshape(S, H, D)
    k = k.reshape(S, H, D)
    v = v.reshape(S, H, D)

    def rot(t):
        return jnp.concatenate([-t[..., D // 2:], t[..., :D // 2]], axis=-1)

    c, s = cos[:, None, :], sin[:, None, :]
    q = q * c + rot(q) * s
    k = k * c + rot(k) * s

    seg = jnp.searchsorted(cu_seqlens[1:], jnp.arange(S), side='right')
    mask = seg[:, None] == seg[None, :]
    scores = jnp.einsum('qhd,khd->hqk', q, k) / jnp.sqrt(float(D))
    scores = jnp.where(mask[None], scores, -1e30)
    p = jax.nn.softmax(scores, axis=-1)
    attn = jnp.einsum('hqk,khd->qhd', p, v).reshape(S, dim)
    attn = attn @ params['proj_w'] + params['proj_b']
    h2 = attn + residual
    n2 = ln(h2, params['norm2_w'], params['norm2_b'])
    out = jax.nn.gelu(n2 @ params['fc1_w'] + params['fc1_b'],
                      approximate=False) @ params['fc2_w'] + params['fc2_b']
    return out, h2


if __name__ == "__main__":
    # Synthetic config: embed_dim=32, num_heads=4 (head_dim=8), mlp_ratio=8
    # (hidden=256); two "images" of 16 patches each -> seq=32.  Small explicit
    # tile sizes exercise the multi-tile grids, kv-range skip and accumulators.
    embed_dim, num_heads, mlp_ratio = 32, 4, 8
    seq = 32
    head_dim = embed_dim // num_heads

    key = jax.random.PRNGKey(0)
    kx, kp = jax.random.split(key)
    hidden_states = jax.random.normal(kx, (seq, embed_dim), jnp.float32)
    cu_seqlens = jnp.array([0, 16, 32], dtype=jnp.int32)
    rope = make_rotary(seq, head_dim)
    params = init_params(kp, embed_dim, num_heads, mlp_ratio)

    tiles = dict(block_m=8, block_q=8, block_kv=8, block_h=128)

    # first block (residual=None path), then second block (residual path)
    out1, res1 = qwen2vl_vision_block(params, hidden_states, cu_seqlens,
                                      rope, residual=None, **tiles)
    out2, res2 = qwen2vl_vision_block(params, out1, cu_seqlens,
                                      rope, residual=res1, **tiles)
    jax.block_until_ready((out2, res2))

    ref_out1, ref_res1 = reference_block(params, hidden_states, cu_seqlens,
                                         rope, residual=None)
    ref_out2, ref_res2 = reference_block(params, ref_out1, cu_seqlens,
                                         rope, residual=ref_res1)

    assert out1.shape == (seq, embed_dim) and res1.shape == (seq, embed_dim)
    assert jnp.allclose(out1, ref_out1, atol=2e-2, rtol=2e-2)
    assert jnp.allclose(res1, ref_res1, atol=2e-2, rtol=2e-2)
    assert jnp.allclose(out2, ref_out2, atol=2e-2, rtol=2e-2)
    assert jnp.allclose(res2, ref_res2, atol=2e-2, rtol=2e-2)
    print("KERNEL_OK")
</pallas_src>

<mosaic_0001>
module attributes {stable_mosaic.version = 11 : i64} {
  func.func @_ln_qkv_rope_kernel(%arg0: i32, %arg1: memref<8x32xf32, #tpu.memory_space<vmem>>, %arg2: memref<1x32xf32, #tpu.memory_space<vmem>>, %arg3: memref<1x32xf32, #tpu.memory_space<vmem>>, %arg4: memref<32x96xf32, #tpu.memory_space<vmem>>, %arg5: memref<1x96xf32, #tpu.memory_space<vmem>>, %arg6: memref<8x8xf32, #tpu.memory_space<vmem>>, %arg7: memref<8x8xf32, #tpu.memory_space<vmem>>, %arg8: memref<8x32xf32, #tpu.memory_space<vmem>>, %arg9: memref<8x32xf32, #tpu.memory_space<vmem>>, %arg10: memref<8x32xf32, #tpu.memory_space<vmem>>) attributes {dimension_semantics = [#tpu.dimension_semantics<parallel>], iteration_bounds = array<i64: 4>, scalar_prefetch = 0 : i64, scratch_operands = 0 : i64, tpu.core_type = #tpu.core_type<tc>, window_params = [{transform_indices = @transform_0, window_bounds = array<i64: 8, 32>}, {pipeline_mode = #tpu.pipeline_mode<synchronous>, transform_indices = @transform_1, window_bounds = array<i64: 1, 32>}, {pipeline_mode = #tpu.pipeline_mode<synchronous>, transform_indices = @transform_2, window_bounds = array<i64: 1, 32>}, {pipeline_mode = #tpu.pipeline_mode<synchronous>, transform_indices = @transform_3, window_bounds = array<i64: 32, 96>}, {pipeline_mode = #tpu.pipeline_mode<synchronous>, transform_indices = @transform_4, window_bounds = array<i64: 1, 96>}, {transform_indices = @transform_5, window_bounds = array<i64: 8, 8>}, {transform_indices = @transform_6, window_bounds = array<i64: 8, 8>}, {transform_indices = @transform_7, window_bounds = array<i64: 8, 32>}, {transform_indices = @transform_8, window_bounds = array<i64: 8, 32>}, {transform_indices = @transform_9, window_bounds = array<i64: 8, 32>}]} {
    %c0 = arith.constant 0 : index
    %c0_0 = arith.constant 0 : index
    %0 = vector.load %arg1[%c0, %c0_0] : memref<8x32xf32, #tpu.memory_space<vmem>>, vector<8x32xf32>
    %c0_1 = arith.constant 0 : index
    %c0_2 = arith.constant 0 : index
    %1 = vector.load %arg2[%c0_1, %c0_2] : memref<1x32xf32, #tpu.memory_space<vmem>>, vector<1x32xf32>
    %c0_3 = arith.constant 0 : index
    %c0_4 = arith.constant 0 : index
    %2 = vector.load %arg3[%c0_3, %c0_4] : memref<1x32xf32, #tpu.memory_space<vmem>>, vector<1x32xf32>
    %cst = arith.constant dense<0.000000e+00> : vector<8xf32>
    %3 = vector.multi_reduction <add>, %0, %cst [1] : vector<8x32xf32> to vector<8xf32>
    %4 = vector.shape_cast %3 : vector<8xf32> to vector<8x1xf32>
    %cst_5 = arith.constant 3.200000e+01 : f32
    %5 = vector.broadcast %cst_5 : f32 to vector<8x1xf32>
    %6 = arith.divf %4, %5 : vector<8x1xf32>
    %7 = vector.broadcast %6 : vector<8x1xf32> to vector<8x32xf32>
    %8 = arith.subf %0, %7 : vector<8x32xf32>
    %9 = arith.mulf %8, %8 : vector<8x32xf32>
    %cst_6 = arith.constant dense<0.000000e+00> : vector<8xf32>
    %10 = vector.multi_reduction <add>, %9, %cst_6 [1] : vector<8x32xf32> to vector<8xf32>
    %11 = vector.shape_cast %10 : vector<8xf32> to vector<8x1xf32>
    %cst_7 = arith.constant 3.200000e+01 : f32
    %12 = vector.broadcast %cst_7 : f32 to vector<8x1xf32>
    %13 = arith.divf %11, %12 : vector<8x1xf32>
    %14 = vector.broadcast %6 : vector<8x1xf32> to vector<8x32xf32>
    %15 = arith.subf %0, %14 : vector<8x32xf32>
    %cst_8 = arith.constant 9.99999997E-7 : f32
    %16 = vector.broadcast %cst_8 : f32 to vector<8x1xf32>
    %17 = arith.addf %13, %16 : vector<8x1xf32>
    %18 = math.rsqrt %17 : vector<8x1xf32>
    %19 = vector.broadcast %18 : vector<8x1xf32> to vector<8x32xf32>
    %20 = arith.mulf %15, %19 : vector<8x32xf32>
    %21 = vector.broadcast %1 : vector<1x32xf32> to vector<8x32xf32>
    %22 = arith.mulf %20, %21 : vector<8x32xf32>
    %23 = vector.broadcast %2 : vector<1x32xf32> to vector<8x32xf32>
    %24 = arith.addf %22, %23 : vector<8x32xf32>
    %c0_9 = arith.constant 0 : index
    %c0_10 = arith.constant 0 : index
    %25 = vector.load %arg4[%c0_9, %c0_10] : memref<32x96xf32, #tpu.memory_space<vmem>>, vector<32x96xf32>
    %cst_11 = arith.constant dense<0.000000e+00> : vector<8x96xf32>
    %26 = tpu.matmul %24, %25, %cst_11 {dimension_numbers = #tpu.dot_dimension_numbers<[1], [0], [0], [1], [0, 0, 1, 1], [], []>} : vector<8x32xf32>, vector<32x96xf32>, vector<8x96xf32> -> vector<8x96xf32>
    %c0_12 = arith.constant 0 : index
    %c0_13 = arith.constant 0 : index
    %27 = vector.load %arg5[%c0_12, %c0_13] : memref<1x96xf32, #tpu.memory_space<vmem>>, vector<1x96xf32>
    %28 = vector.broadcast %27 : vector<1x96xf32> to vector<8x96xf32>
    %29 = arith.addf %26, %28 : vector<8x96xf32>
    %c0_14 = arith.constant 0 : index
    %c0_15 = arith.constant 0 : index
    %30 = vector.load %arg6[%c0_14, %c0_15] : memref<8x8xf32, #tpu.memory_space<vmem>>, vector<8x8xf32>
    %c0_16 = arith.constant 0 : index
    %c0_17 = arith.constant 0 : index
    %31 = vector.load %arg7[%c0_16, %c0_17] : memref<8x8xf32, #tpu.memory_space<vmem>>, vector<8x8xf32>
    %32 = vector.extract_strided_slice %29 {offsets = [0, 64], sizes = [8, 32], strides = [1, 1]} : vector<8x96xf32> to vector<8x32xf32>
    %c0_18 = arith.constant 0 : index
    %c0_19 = arith.constant 0 : index
    %33 = vector.load %arg10[%c0_18, %c0_19] : memref<8x32xf32, #tpu.memory_space<vmem>>, vector<8x32xf32>
    tpu.vector_store %arg10[%c0_18, %c0_19], %32 {strides = array<i32>} : memref<8x32xf32, #tpu.memory_space<vmem>>, vector<8x32xf32>,
    %34 = vector.extract_strided_slice %29 {offsets = [0, 0], sizes = [8, 8], strides = [1, 1]} : vector<8x96xf32> to vector<8x8xf32>
    %35 = vector.extract_strided_slice %29 {offsets = [0, 32], sizes = [8, 8], strides = [1, 1]} : vector<8x96xf32> to vector<8x8xf32>
    %36 = arith.mulf %34, %30 : vector<8x8xf32>
    %37 = vector.extract_strided_slice %34 {offsets = [0, 4], sizes = [8, 4], strides = [1, 1]} : vector<8x8xf32> to vector<8x4xf32>
    %cst_20 = arith.constant 0.000000e+00 : f32
    %38 = vector.broadcast %cst_20 : f32 to vector<8x4xf32>
    %39 = arith.subf %38, %37 : vector<8x4xf32>
    %40 = vector.extract_strided_slice %34 {offsets = [0, 0], sizes = [8, 4], strides = [1, 1]} : vector<8x8xf32> to vector<8x4xf32>
    %41 = tpu.concatenate %39, %40 in 1 : vector<8x4xf32>, vector<8x4xf32> -> vector<8x8xf32>
    %42 = arith.mulf %41, %31 : vector<8x8xf32>
    %43 = arith.addf %36, %42 : vector<8x8xf32>
    %cst_21 = arith.constant 0.353553385 : f32
    %44 = vector.broadcast %cst_21 : f32 to vector<8x8xf32>
    %45 = arith.mulf %43, %44 : vector<8x8xf32>
    %46 = arith.mulf %35, %30 : vector<8x8xf32>
    %47 = vector.extract_strided_slice %35 {offsets = [0, 4], sizes = [8, 4], strides = [1, 1]} : vector<8x8xf32> to vector<8x4xf32>
    %cst_22 = arith.constant 0.000000e+00 : f32
    %48 = vector.broadcast %cst_22 : f32 to vector<8x4xf32>
    %49 = arith.subf %48, %47 : vector<8x4xf32>
    %50 = vector.extract_strided_slice %35 {offsets = [0, 0], sizes = [8, 4], strides = [1, 1]} : vector<8x8xf32> to vector<8x4xf32>
    %51 = tpu.concatenate %49, %50 in 1 : vector<8x4xf32>, vector<8x4xf32> -> vector<8x8xf32>
    %52 = arith.mulf %51, %31 : vector<8x8xf32>
    %53 = arith.addf %46, %52 : vector<8x8xf32>
    %c0_23 = arith.constant 0 : index
    %c0_24 = arith.constant 0 : index
    %54 = vector.load %arg8[%c0_23, %c0_24] : memref<8x32xf32, #tpu.memory_space<vmem>>, vector<8x8xf32>
    tpu.vector_store %arg8[%c0_23, %c0_24], %45 {strides = array<i32>} : memref<8x32xf32, #tpu.memory_space<vmem>>, vector<8x8xf32>,
    %c0_25 = arith.constant 0 : index
    %c0_26 = arith.constant 0 : index
    %55 = vector.load %arg9[%c0_25, %c0_26] : memref<8x32xf32, #tpu.memory_space<vmem>>, vector<8x8xf32>
    tpu.vector_store %arg9[%c0_25, %c0_26], %53 {strides = array<i32>} : memref<8x32xf32, #tpu.memory_space<vmem>>, vector<8x8xf32>,
    %56 = vector.extract_strided_slice %29 {offsets = [0, 8], sizes = [8, 8], strides = [1, 1]} : vector<8x96xf32> to vector<8x8xf32>
    %57 = vector.extract_strided_slice %29 {offsets = [0, 40], sizes = [8, 8], strides = [1, 1]} : vector<8x96xf32> to vector<8x8xf32>
    %58 = arith.mulf %56, %30 : vector<8x8xf32>
    %59 = vector.extract_strided_slice %56 {offsets = [0, 4], sizes = [8, 4], strides = [1, 1]} : vector<8x8xf32> to vector<8x4xf32>
    %cst_27 = arith.constant 0.000000e+00 : f32
    %60 = vector.broadcast %cst_27 : f32 to vector<8x4xf32>
    %61 = arith.subf %60, %59 : vector<8x4xf32>
    %62 = vector.extract_strided_slice %56 {offsets = [0, 0], sizes = [8, 4], strides = [1, 1]} : vector<8x8xf32> to vector<8x4xf32>
    %63 = tpu.concatenate %61, %62 in 1 : vector<8x4xf32>, vector<8x4xf32> -> vector<8x8xf32>
    %64 = arith.mulf %63, %31 : vector<8x8xf32>
    %65 = arith.addf %58, %64 : vector<8x8xf32>
    %cst_28 = arith.constant 0.353553385 : f32
    %66 = vector.broadcast %cst_28 : f32 to vector<8x8xf32>
    %67 = arith.mulf %65, %66 : vector<8x8xf32>
    %68 = arith.mulf %57, %30 : vector<8x8xf32>
    %69 = vector.extract_strided_slice %57 {offsets = [0, 4], sizes = [8, 4], strides = [1, 1]} : vector<8x8xf32> to vector<8x4xf32>
    %cst_29 = arith.constant 0.000000e+00 : f32
    %70 = vector.broadcast %cst_29 : f32 to vector<8x4xf32>
    %71 = arith.subf %70, %69 : vector<8x4xf32>
    %72 = vector.extract_strided_slice %57 {offsets = [0, 0], sizes = [8, 4], strides = [1, 1]} : vector<8x8xf32> to vector<8x4xf32>
    %73 = tpu.concatenate %71, %72 in 1 : vector<8x4xf32>, vector<8x4xf32> -> vector<8x8xf32>
    %74 = arith.mulf %73, %31 : vector<8x8xf32>
    %75 = arith.addf %68, %74 : vector<8x8xf32>
    %c0_30 = arith.constant 0 : index
    %c8 = arith.constant 8 : index
    %76 = vector.load %arg8[%c0_30, %c8] : memref<8x32xf32, #tpu.memory_space<vmem>>, vector<8x8xf32>
    tpu.vector_store %arg8[%c0_30, %c8], %67 {strides = array<i32>} : memref<8x32xf32, #tpu.memory_space<vmem>>, vector<8x8xf32>,
    %c0_31 = arith.constant 0 : index
    %c8_32 = arith.constant 8 : index
    %77 = vector.load %arg9[%c0_31, %c8_32] : memref<8x32xf32, #tpu.memory_space<vmem>>, vector<8x8xf32>
    tpu.vector_store %arg9[%c0_31, %c8_32], %75 {strides = array<i32>} : memref<8x32xf32, #tpu.memory_space<vmem>>, vector<8x8xf32>,
    %78 = vector.extract_strided_slice %29 {offsets = [0, 16], sizes = [8, 8], strides = [1, 1]} : vector<8x96xf32> to vector<8x8xf32>
    %79 = vector.extract_strided_slice %29 {offsets = [0, 48], sizes = [8, 8], strides = [1, 1]} : vector<8x96xf32> to vector<8x8xf32>
    %80 = arith.mulf %78, %30 : vector<8x8xf32>
    %81 = vector.extract_strided_slice %78 {offsets = [0, 4], sizes = [8, 4], strides = [1, 1]} : vector<8x8xf32> to vector<8x4xf32>
    %cst_33 = arith.constant 0.000000e+00 : f32
    %82 = vector.broadcast %cst_33 : f32 to vector<8x4xf32>
    %83 = arith.subf %82, %81 : vector<8x4xf32>
    %84 = vector.extract_strided_slice %78 {offsets = [0, 0], sizes = [8, 4], strides = [1, 1]} : vector<8x8xf32> to vector<8x4xf32>
    %85 = tpu.concatenate %83, %84 in 1 : vector<8x4xf32>, vector<8x4xf32> -> vector<8x8xf32>
    %86 = arith.mulf %85, %31 : vector<8x8xf32>
    %87 = arith.addf %80, %86 : vector<8x8xf32>
    %cst_34 = arith.constant 0.353553385 : f32
    %88 = vector.broadcast %cst_34 : f32 to vector<8x8xf32>
    %89 = arith.mulf %87, %88 : vector<8x8xf32>
    %90 = arith.mulf %79, %30 : vector<8x8xf32>
    %91 = vector.extract_strided_slice %79 {offsets = [0, 4], sizes = [8, 4], strides = [1, 1]} : vector<8x8xf32> to vector<8x4xf32>
    %cst_35 = arith.constant 0.000000e+00 : f32
    %92 = vector.broadcast %cst_35 : f32 to vector<8x4xf32>
    %93 = arith.subf %92, %91 : vector<8x4xf32>
    %94 = vector.extract_strided_slice %79 {offsets = [0, 0], sizes = [8, 4], strides = [1, 1]} : vector<8x8xf32> to vector<8x4xf32>
    %95 = tpu.concatenate %93, %94 in 1 : vector<8x4xf32>, vector<8x4xf32> -> vector<8x8xf32>
    %96 = arith.mulf %95, %31 : vector<8x8xf32>
    %97 = arith.addf %90, %96 : vector<8x8xf32>
    %c0_36 = arith.constant 0 : index
    %c16 = arith.constant 16 : index
    %98 = vector.load %arg8[%c0_36, %c16] : memref<8x32xf32, #tpu.memory_space<vmem>>, vector<8x8xf32>
    tpu.vector_store %arg8[%c0_36, %c16], %89 {strides = array<i32>} : memref<8x32xf32, #tpu.memory_space<vmem>>, vector<8x8xf32>,
    %c0_37 = arith.constant 0 : index
    %c16_38 = arith.constant 16 : index
    %99 = vector.load %arg9[%c0_37, %c16_38] : memref<8x32xf32, #tpu.memory_space<vmem>>, vector<8x8xf32>
    tpu.vector_store %arg9[%c0_37, %c16_38], %97 {strides = array<i32>} : memref<8x32xf32, #tpu.memory_space<vmem>>, vector<8x8xf32>,
    %100 = vector.extract_strided_slice %29 {offsets = [0, 24], sizes = [8, 8], strides = [1, 1]} : vector<8x96xf32> to vector<8x8xf32>
    %101 = vector.extract_strided_slice %29 {offsets = [0, 56], sizes = [8, 8], strides = [1, 1]} : vector<8x96xf32> to vector<8x8xf32>
    %102 = arith.mulf %100, %30 : vector<8x8xf32>
    %103 = vector.extract_strided_slice %100 {offsets = [0, 4], sizes = [8, 4], strides = [1, 1]} : vector<8x8xf32> to vector<8x4xf32>
    %cst_39 = arith.constant 0.000000e+00 : f32
    %104 = vector.broadcast %cst_39 : f32 to vector<8x4xf32>
    %105 = arith.subf %104, %103 : vector<8x4xf32>
    %106 = vector.extract_strided_slice %100 {offsets = [0, 0], sizes = [8, 4], strides = [1, 1]} : vector<8x8xf32> to vector<8x4xf32>
    %107 = tpu.concatenate %105, %106 in 1 : vector<8x4xf32>, vector<8x4xf32> -> vector<8x8xf32>
    %108 = arith.mulf %107, %31 : vector<8x8xf32>
    %109 = arith.addf %102, %108 : vector<8x8xf32>
    %cst_40 = arith.constant 0.353553385 : f32
    %110 = vector.broadcast %cst_40 : f32 to vector<8x8xf32>
    %111 = arith.mulf %109, %110 : vector<8x8xf32>
    %112 = arith.mulf %101, %30 : vector<8x8xf32>
    %113 = vector.extract_strided_slice %101 {offsets = [0, 4], sizes = [8, 4], strides = [1, 1]} : vector<8x8xf32> to vector<8x4xf32>
    %cst_41 = arith.constant 0.000000e+00 : f32
    %114 = vector.broadcast %cst_41 : f32 to vector<8x4xf32>
    %115 = arith.subf %114, %113 : vector<8x4xf32>
    %116 = vector.extract_strided_slice %101 {offsets = [0, 0], sizes = [8, 4], strides = [1, 1]} : vector<8x8xf32> to vector<8x4xf32>
    %117 = tpu.concatenate %115, %116 in 1 : vector<8x4xf32>, vector<8x4xf32> -> vector<8x8xf32>
    %118 = arith.mulf %117, %31 : vector<8x8xf32>
    %119 = arith.addf %112, %118 : vector<8x8xf32>
    %c0_42 = arith.constant 0 : index
    %c24 = arith.constant 24 : index
    %120 = vector.load %arg8[%c0_42, %c24] : memref<8x32xf32, #tpu.memory_space<vmem>>, vector<8x8xf32>
    tpu.vector_store %arg8[%c0_42, %c24], %111 {strides = array<i32>} : memref<8x32xf32, #tpu.memory_space<vmem>>, vector<8x8xf32>,
    %c0_43 = arith.constant 0 : index
    %c24_44 = arith.constant 24 : index
    %121 = vector.load %arg9[%c0_43, %c24_44] : memref<8x32xf32, #tpu.memory_space<vmem>>, vector<8x8xf32>
    tpu.vector_store %arg9[%c0_43, %c24_44], %119 {strides = array<i32>} : memref<8x32xf32, #tpu.memory_space<vmem>>, vector<8x8xf32>,
    return
  }
  func.func @transform_0(%arg0: i32) -> (i32, i32) {
    %c0_i32 = arith.constant 0 : i32
    %c0_i32_0 = arith.constant 0 : i32
    return %arg0, %c0_i32 : i32, i32
  }
  func.func @transform_1(%arg0: i32) -> (i32, i32) {
    %c0_i32 = arith.constant 0 : i32
    %c0_i32_0 = arith.constant 0 : i32
    %c0_i32_1 = arith.constant 0 : i32
    return %c0_i32, %c0_i32_0 : i32, i32
  }
  func.func @transform_2(%arg0: i32) -> (i32, i32) {
    %c0_i32 = arith.constant 0 : i32
    %c0_i32_0 = arith.constant 0 : i32
    %c0_i32_1 = arith.constant 0 : i32
    return %c0_i32, %c0_i32_0 : i32, i32
  }
  func.func @transform_3(%arg0: i32) -> (i32, i32) {
    %c0_i32 = arith.constant 0 : i32
    %c0_i32_0 = arith.constant 0 : i32
    %c0_i32_1 = arith.constant 0 : i32
    return %c0_i32, %c0_i32_0 : i32, i32
  }
  func.func @transform_4(%arg0: i32) -> (i32, i32) {
    %c0_i32 = arith.constant 0 : i32
    %c0_i32_0 = arith.constant 0 : i32
    %c0_i32_1 = arith.constant 0 : i32
    return %c0_i32, %c0_i32_0 : i32, i32
  }
  func.func @transform_5(%arg0: i32) -> (i32, i32) {
    %c0_i32 = arith.constant 0 : i32
    %c0_i32_0 = arith.constant 0 : i32
    return %arg0, %c0_i32 : i32, i32
  }
  func.func @transform_6(%arg0: i32) -> (i32, i32) {
    %c0_i32 = arith.constant 0 : i32
    %c0_i32_0 = arith.constant 0 : i32
    return %arg0, %c0_i32 : i32, i32
  }
  func.func @transform_7(%arg0: i32) -> (i32, i32) {
    %c0_i32 = arith.constant 0 : i32
    %c0_i32_0 = arith.constant 0 : i32
    return %arg0, %c0_i32 : i32, i32
  }
  func.func @transform_8(%arg0: i32) -> (i32, i32) {
    %c0_i32 = arith.constant 0 : i32
    %c0_i32_0 = arith.constant 0 : i32
    return %arg0, %c0_i32 : i32, i32
  }
  func.func @transform_9(%arg0: i32) -> (i32, i32) {
    %c0_i32 = arith.constant 0 : i32
    %c0_i32_0 = arith.constant 0 : i32
    return %arg0, %c0_i32 : i32, i32
  }
}

</mosaic_0001>

<bundles_post_ra>
// kernel: tpu_custom_call.1
= control target key start
LH: loop header
LB: loop body
LE: loop exit
PB: predicated region body
PF: predicated region fallthrough
CT: control target
= control target key end

     0   :  { %s1428_s0 = inlined_call_operand.vmem [shape: f32[32,32], index: 0, kind: input, shape index: {}]   ;;  %s1429_s1 = inlined_call_operand.vmem [shape: f32[1,32], index: 1, kind: input, shape index: {}]   ;;  %s1430_s2 = inlined_call_operand.vmem [shape: f32[1,32], index: 2, kind: input, shape index: {}]   ;;  %s1431_s3 = inlined_call_operand.vmem [shape: f32[32,96], index: 3, kind: input, shape index: {}]   ;;  %s1432_s4 = inlined_call_operand.vmem [shape: f32[1,96], index: 4, kind: input, shape index: {}]   ;;  %s1433_s5 = inlined_call_operand.vmem [shape: f32[32,8], index: 5, kind: input, shape index: {}]   ;;  %s1434_s6 = inlined_call_operand.vmem [shape: f32[32,8], index: 6, kind: input, shape index: {}]   ;;  %s1435_s7 = inlined_call_operand.hbm [shape: f32[32,32], index: 7, kind: output, shape index: {0}]   ;;  %s1436_s8 = inlined_call_operand.hbm [shape: f32[32,32], index: 8, kind: output, shape index: {1}]   ;;  %s1437_s9 = inlined_call_operand.hbm [shape: f32[32,32], index: 9, kind: output, shape index: {2}]  }
   0x1   :  { %1440 = sst [smem:[#allocation9_spill]] %s1428_s0 }
   0x2   :  { %1441 = sst [smem:[#allocation10_spill]] %s1429_s1 }
   0x3   :  { %1442 = sst [smem:[#allocation11_spill]] %s1430_s2 }
   0x4   :  { %15 = vsyncpa [#allocation3], 0 }
   0x5   :  { %17 = vsyncpa [#allocation3 + $0x1], 0 }
   0x6   :  { %18 = vsyncpa [#allocation5], 0 }
   0x7   :  { %20 = vsyncpa [#allocation5 + $0x1], 0  ;;  %s1162_s30 = smov 0   ;;  %s1164_s10 = smov 0  }
   0x8   :  { %s1166_s11 = smov 0   ;;  %s1168_s12 = smov 0  }
   0x9 LB: > { %s1183_s13 = sadd.s32 4294967295, %s1087_s12   ;;  %s1438_s14 = sadd.s32 4294967294, %s1087_s12   ;;  %s1087_s12 = sphi %s1168_s12, %s1453_s12   ;;  %s1083_s11 = sphi %s1166_s11, %s1452_s11   ;;  %s1079_s10 = sphi %s1164_s10, %s1451_s10   ;;  %s1075_s30 = sphi %s1162_s30, %s1450_s30  }
   0xa   : > { %s1187_s15 = sadd.s32 1, %s1087_s12   ;;  %s195_s16 = sadd.s32 1, %s1083_s11 }
   0xb   : > { %s192_s17 = ssub.s32 %s1087_s12, %s1187_s15  ;;  %p205_p0 = scmp.ne.s32.totalorder %s1083_s11, %s1079_s10 }
   0xc   : > { %p193_p1 = scmp.eq.s32.totalorder %s192_s17, 0  ;;  %p206_p2 = scmp.eq.s32.totalorder %s1183_s13, 3 }
   0xd   : > { %p211_p3 = scmp.ne.s32.totalorder %s1079_s10, %s1075_s30  ;;  %p212_p4 = scmp.eq.s32.totalorder %s1438_s14, 3 }
   0xe   : > { %s1200_s18 = scalar_select %p193_p1, %s1083_s11, %s195_s16  }
   0xf   : > { %p1202_p5 = por %p206_p2, %p205_p0  ;;  %p1206_p6 = por %p212_p4, %p211_p3 }
  0x10   : > { %p865_p7 = scmp.ge.s32.totalorder %s1087_s12, 1  ;;  %p315_p8 = scmp.lt.s32.totalorder %s1087_s12, 5 }
  0x12   : > { %p316_p9 = pnand %p865_p7, %p315_p8 }
  0x13   : > { %p368_p10 = scmp.lt.s32.totalorder (!%p316_p9), %s1183_s13, 3  ;;  %s1445_s0 = sld [smem:[#allocation9_spill]] (!%p316_p9) }
  0x14   : > { %319 = sbr.rel (%p316_p9) target bundleno = 943 (0x3af), region = 48  ;;  %s1446_s1 = sld [smem:[#allocation10_spill]] (!%p316_p9) }
  0x15   : > { %s1447_s2 = sld [smem:[#allocation11_spill]] (!%p316_p9)  ;;  %s1091_s16 = smov (!%p316_p9), 100  }
  0x16   : > { %s1092_s17 = smov (!%p316_p9), 84   ;;  %s1439_s26 = smov (!%p316_p9), 124  }
  0x17   : > { %s1095_s27 = smov (!%p316_p9), 40   ;;  %s1096_s28 = smov (!%p316_p9), 108  }
  0x18   : > { %s1097_s29 = smov (!%p316_p9), 76   ;;  %s1098_s23 = smov (!%p316_p9), 48  }
  0x19   : > { %s369_s21 = scalar_select %p368_p10, %s1183_s13, 3  ;;  %vm383_vm0 = vcmask 261120   ;;  %v415_v7 = vld [vmem:[%s1431_s3 + $0x18] sm:$0xff]  ;;  %v1089_v8 = vmov 0.0   ;;  %v414_v9 = vld [vmem:[%s1431_s3 + $0x10] sm:$0xff]  ;;  %vm1090_vm1 = vmmov 0  }
  0x1a   : > { %889 = vmatprep.subr.mxu0 %v1089_v8  ;;  %897 = vmatprep.mubr.msk.f32.mxu0 %vm1090_vm1, %v1089_v8  ;;  %v413_v10 = vld [vmem:[%s1431_s3 + $0x8] sm:$0xff]  ;;  %v412_v11 = vld [vmem:[%s1431_s3] sm:$0xff]  ;;  %s1099_s24 = smov 68   ;;  %vm512_vm2 = vcmask 31744   ;;  %s1448_s14 = smov 124   ;;  %vm535_vm3 = vcmask 64512  }
  0x1b   : > { %s1214_s22 = sshll.u32 %s369_s21, 3  ;;  %890 = vmatpush3.msra.mxu0 %v415_v7  ;;  %v872_v16 = vld [vmem:[%s1446_s1] ss:$0 sm:$0xff]  ;;  %s1093_s21 = smov 92   ;;  %vm577_vm4 = vcmask 130112   ;;  %vm619_vm5 = vcmask 195712  }
  0x1c   : > { %s371_s25 = scalar_lea.vmem %s1445_s0, %s1214_s22  ;;  %891 = vmatprep.subr.mxu0 %v1089_v8  ;;  %v873_v18 = vld [vmem:[%s1447_s2] ss:$0 sm:$0xff]  ;;  %vm661_vm6 = vcmask 261312  }
  0x1d   : > { %v380_v0 = vld [vmem:[%s371_s25] sm:$0xff]  ;;  %892 = vmatpush3.msra.mxu0 %v414_v9  ;;  %s375_s25 = scalar_lea.vmem %s1433_s5, %s1214_s22 }
  0x1e   : > { %v384_v1 = vsel %vm383_vm0, %v380_v0, 0.0  ;;  %893 = vmatprep.subr.mxu0 %v1089_v8  ;;  %v874_v21 = vld [vmem:[%s1432_s4] ss:$0 sm:$0xff] }
  0x1f   : > { %385 = vadd.xlane.f32.xlu0 %v384_v1  ;;  %894 = vmatpush3.msra.mxu0 %v413_v10  ;;  %v1256_v26 = vld [vmem:[%s375_s25] sm:$0xff]  ;;  %s1102_s25 = smov 116  }
  0x20   : > { %895 = vmatprep.subr.mxu0 %v1089_v8 }
  0x21   : > { %896 = vmatpush3.msra.mxu0 %v412_v11 }
  0xa8   : > { %v386_v2 = vpop.xlane.xlu0 %385 }
  0xa9   : > { %v388_v3 = vmul.f32 0.03125, %v386_v2 }
  0xab   : > { %v389_v4 = vsub.f32 %v380_v0, %v388_v3 }
  0xad   : > { %v390_v5 = vmul.f32 %v389_v4, %v389_v4 }
  0xaf   : > { %v391_v6 = vsel %vm383_vm0, %v390_v5, 0.0 }
  0xb0   : > { %392 = vadd.xlane.f32.xlu0 %v391_v6 }
 0x139   : > { %v393_v12 = vpop.xlane.xlu0 %392 }
 0x13a   : > { %v394_v13 = vmul.f32 0.03125, %v393_v12 }
 0x13c   : > { %v395_v14 = vadd.f32 1e-06, %v394_v13 }
 0x13e   : > { %969 = vrsqrt.f32 %v395_v14 }
 0x14b   : > { %v970_v15 = vpop.eup %969 }
 0x14c   : > { %v397_v17 = vmul.f32 %v970_v15, %v389_v4 }
 0x14e   : > { %v404_v19 = vmul.f32 %v872_v16, %v397_v17 }
 0x150   : > { %v411_v20 = vadd.f32 %v873_v18, %v404_v19 }
 0x152   : > { %898 = vmatmul.mubr.msk.f32.vlgmr.msra.gmra.mxu0 %vm383_vm0, %v411_v20 }
 0x212   : > { %v492_v22 = vpop.f32.mrf.mxu0 }
 0x213   : > { %v1244_v23 = vadd.f32 %v874_v21, %v492_v22 }
 0x214   : > { %v899_v24 = vpop.f32.mrf.mxu0 }
 0x215   : > { %525 = vrot.lane.b32.xlu1 %v1244_v23, %s1091_s16  ;;  %v504_v25 = vsub.f32 0.0, %v1244_v23  ;;  %v503_v11 = vmul.f32 %v1256_v26, %v1244_v23 }
 0x217   : > { %564 = vrot.lane.b32.xlu0 %v504_v25, %s1092_s17 }
 0x219   : > { %522 = vrot.lane.b32.xlu1 %v504_v25, %s1093_s21 }
 0x21b   : > { %549 = vrot.lane.b32.xlu0 %v1244_v23, %s1439_s26  ;;  %s1105_s26 = smov 16  }
 0x21d   : > { %567 = vrot.lane.b32.xlu1 %v1244_v23, %s1093_s21  ;;  %s1100_s21 = smov 56  }
 0x21f   : > { %560 = vrot.lane.b32.xlu0 %v1256_v26, %s1095_s27 }
 0x221   : > { %609 = vrot.lane.b32.xlu1 %v1244_v23, %s1092_s17  ;;  %s1101_s17 = smov 32  }
 0x223   : > { %633 = vrot.lane.b32.xlu0 %v1244_v23, %s1096_s28 }
 0x225   : > { %606 = vrot.lane.b32.xlu1 %v504_v25, %s1097_s29 }
 0x227   : > { %602 = vrot.lane.b32.xlu0 %v1256_v26, %s1098_s23 }
 0x229   : > { %648 = vrot.lane.b32.xlu1 %v504_v25, %s1099_s24  ;;  %s379_s24 = scalar_lea.vmem %s1434_s6, %s1214_s22  ;;  %s1103_s22 = smov 8  }
 0x22a   : > { %v1274_v28 = vld [vmem:[%s379_s24] sm:$0xff] }
 0x22b   : > { %588 = vrot.lane.b32.xlu0 %v504_v25, %s1096_s28  ;;  %s1107_s28 = smov 96  }
 0x22d   : > { %651 = vrot.lane.b32.xlu1 %v1244_v23, %s1097_s29  ;;  %s1108_s29 = smov 64  }
 0x22f   : > { %644 = vrot.lane.b32.xlu0 %v1256_v26, %s1100_s21 }
 0x231   : > { %518 = vrot.lane.b32.xlu1 %v1256_v26, %s1101_s17 }
 0x235   : > { %591 = vrot.lane.b32.xlu1 %v1244_v23, %s1102_s25 }
 0x239   : > { %546 = vrot.lane.b32.xlu1 %v504_v25, %s1102_s25  ;;  %s1319_s25 = sshll.u32 %s1183_s13, 7 }
 0x23d   : > { %630 = vrot.lane.b32.xlu1 %v504_v25, %s1091_s16  ;;  %s1104_s16 = smov 4  }
 0x287   : > { %v526_v27 = vpop.permute.xlu1 %525 }
 0x289   : > { %v565_v32 = vpop.permute.xlu0 %564 }
 0x28b   : > { %v523_v29 = vpop.permute.xlu1 %522 }
 0x28c   : > { %v528_v30 = vsel %vm512_vm2, %v523_v29, %v526_v27 }
 0x28d   : > { %v529_v31 = vmul.f32 %v528_v30, %v1274_v28  ;;  %v550_v37 = vpop.permute.xlu0 %549 }
 0x28f   : > { %531 = vrot.lane.b32.xlu1 %v529_v31, %s1101_s17  ;;  %v568_v33 = vpop.permute.xlu1 %567 }
 0x290   : > { %v570_v34 = vsel %vm512_vm2, %v565_v32, %v568_v33 }
 0x291   : > { %v571_v35 = vmul.f32 %v570_v34, %v1274_v28  ;;  %v561_v41 = vpop.permute.xlu0 %560 }
 0x292   : > { %v563_v62 = vmul.f32 %v561_v41, %v1244_v23 }
 0x293   : > { %573 = vrot.lane.b32.xlu1 %v571_v35, %s1095_s27  ;;  %v610_v36 = vpop.permute.xlu1 %609  ;;  %s1106_s27 = smov 24  }
 0x295   : > { %v634_v45 = vpop.permute.xlu0 %633 }
 0x297   : > { %v607_v38 = vpop.permute.xlu1 %606 }
 0x298   : > { %v612_v39 = vsel %vm512_vm2, %v607_v38, %v610_v36 }
 0x299   : > { %v613_v40 = vmul.f32 %v612_v39, %v1274_v28  ;;  %v603_v48 = vpop.permute.xlu0 %602 }
 0x29a   : > { %v605_v1 = vmul.f32 %v603_v48, %v1244_v23 }
 0x29b   : > { %615 = vrot.lane.b32.xlu1 %v613_v40, %s1098_s23  ;;  %v649_v42 = vpop.permute.xlu1 %648  ;;  %s351_s23 = sand.u32 1, %s1079_s10  }
 0x29d   : > { %v589_v52 = vpop.permute.xlu0 %588 }
 0x29f   : > { %506 = vrot.lane.b32.xlu1 %v504_v25, %s1448_s14  ;;  %v652_v43 = vpop.permute.xlu1 %651 }
 0x2a0   : > { %v654_v44 = vsel %vm512_vm2, %v649_v42, %v652_v43 }
 0x2a1   : > { %v655_v46 = vmul.f32 %v654_v44, %v1274_v28  ;;  %v645_v4 = vpop.permute.xlu0 %644 }
 0x2a2   : > { %v647_v5 = vmul.f32 %v645_v4, %v1244_v23 }
 0x2a3   : > { %542 = vrot.lane.b32.xlu1 %v1256_v26, %s1103_s22  ;;  %657 = vrot.lane.b32.xlu0 %v655_v46, %s1100_s21  ;;  %v519_v47 = vpop.permute.xlu1 %518  ;;  %s1310_s21 = sshll.u32 %s351_s23, 3 }
 0x2a4   : > { %v521_v59 = vmul.f32 %v519_v47, %v1244_v23  ;;  %s353_s17 = scalar_lea.vmem [#allocation2], %s1310_s21 }
 0x2a5   : > { %s692_s24 = sshll.u32 %s353_s17, 4  ;;  %s693_s24 = int_to_ptr.vmem [resolvable:$true] %s692_s24 }
 0x2a7   : > { %509 = vrot.lane.b32.xlu0 %v1244_v23, %s1104_s16  ;;  %v592_v49 = vpop.permute.xlu1 %591  ;;  %s690_s16 = scalar_lea.hbm %s1435_s7, %s1319_s25 }
 0x2a8   : > { %v594_v54 = vsel %vm512_vm2, %v589_v52, %v592_v49 }
 0x2a9   : > { %v595_v56 = vmul.f32 %v594_v54, %v1274_v28 }
 0x2ab   : > { %584 = vrot.lane.b32.xlu0 %v1256_v26, %s1105_s26  ;;  %v547_v50 = vpop.permute.xlu1 %546 }
 0x2ac   : > { %v552_v51 = vsel %vm512_vm2, %v547_v50, %v550_v37 }
 0x2ad   : > { %v553_v53 = vmul.f32 %v552_v51, %v1274_v28 }
 0x2af   : > { %626 = vrot.lane.b32.xlu0 %v1256_v26, %s1106_s27  ;;  %555 = vrot.lane.b32.xlu1 %v553_v53, %s1103_s22  ;;  %v631_v55 = vpop.permute.xlu1 %630 }
 0x2b0   : > { %v636_v57 = vsel %vm512_vm2, %v631_v55, %v634_v45 }
 0x2b1   : > { %v637_v58 = vmul.f32 %v636_v57, %v1274_v28 }
 0x2b3   : > { %597 = vrot.lane.b32.xlu1 %v595_v56, %s1105_s26  ;;  %s669_s26 = scalar_lea.sflag [#allocation3], %s351_s23 }
 0x2b7   : > { %639 = vrot.lane.b32.xlu1 %v637_v58, %s1106_s27  ;;  %s971_s27 = scalar_lea.vmem %s693_s24, 128 }
 0x2b8   : > { %p972_p11 = scmp.ne.s32.totalorder %s693_s24, %s971_s27 }
 0x2ba   : > { %p973_p12 = pnand %p972_p11, %p1202_p5 }
 0x2bc   : > { %p974_p13 = pneg %p973_p12 }
 0x301   : > { %v532_v60 = vpop.permute.xlu1 %531 }
 0x302   : > { %v534_v61 = vadd.f32 %v532_v60, %v521_v59 }
 0x304   : > { %538 = vrot.lane.b32.xlu0 %v534_v61, %s1107_s28 }
 0x305   : > { %v574_v63 = vpop.permute.xlu1 %573 }
 0x306   : > { %v576_v0 = vadd.f32 %v574_v63, %v563_v62 }
 0x308   : > { %580 = vrot.lane.b32.xlu0 %v576_v0, %s1107_s28 }
 0x30d   : > { %v616_v2 = vpop.permute.xlu1 %615 }
 0x30e   : > { %v618_v3 = vadd.f32 %v616_v2, %v605_v1 }
 0x310   : > { %622 = vrot.lane.b32.xlu1 %v618_v3, %s1107_s28 }
 0x311   : > { %v507_v8 = vpop.permute.xlu1 %506 }
 0x314   : > { %499 = vrot.lane.b32.xlu1 %v1244_v23, %s1108_s29 }
 0x315   : > { %v658_v6 = vpop.permute.xlu0 %657  ;;  %v543_v13 = vpop.permute.xlu1 %542 }
 0x316   : > { %v660_v7 = vadd.f32 %v658_v6, %v647_v5  ;;  %v545_v17 = vmul.f32 %v543_v13, %v1244_v23 }
 0x318   : > { %664 = vrot.lane.b32.xlu0 %v660_v7, %s1107_s28  ;;  %s1109_s28 = smov [#allocation2]  }
 0x319   : > { %v510_v9 = vpop.permute.xlu0 %509  ;;  %s975_s29 = sshll.u32 %s1109_s28, 4  ;;  %s976_s29 = int_to_ptr.vmem [resolvable:$false] %s975_s29 }
 0x31a   : > { %v513_v10 = vsel %vm512_vm2, %v507_v8, %v510_v9  ;;  %s977_s0 = scalar_lea.vmem %s976_s29, 256  ;;  %p978_p0 = scmp.lt.s32.totalorder %s693_s24, %s976_s29 }
 0x31b   : > { %v514_v12 = vmul.f32 %v513_v10, %v1274_v28  ;;  %p979_p1 = scmp.lt.s32.totalorder %s977_s0, %s971_s27 }
 0x31d   : > { %v515_v14 = vadd.f32 %v514_v12, %v503_v11  ;;  %v585_v16 = vpop.permute.xlu0 %584  ;;  %p980_p2 = por %p979_p1, %p978_p0 }
 0x31e   : > { %v587_v20 = vmul.f32 %v585_v16, %v1244_v23 }
 0x31f   : > { %v516_v15 = vmul.f32 0.35355338, %v515_v14  ;;  %p981_p3 = pnand %p980_p2, %p974_p13 }
 0x321   : > { %v556_v18 = vpop.permute.xlu1 %555  ;;  %536 = vst.msk [vmem:[%s353_s17] sm:$0xff] %vm535_vm3, %v516_v15  ;;  %v627_v22 = vpop.permute.xlu0 %626 }
 0x322   : > { %v558_v19 = vadd.f32 %v556_v18, %v545_v17  ;;  %v629_v26 = vmul.f32 %v627_v22, %v1244_v23 }
 0x324   : > { %v559_v21 = vmul.f32 0.35355338, %v558_v19 }
 0x325   : > { %v598_v24 = vpop.permute.xlu1 %597 }
 0x326   : > { %v600_v25 = vadd.f32 %v598_v24, %v587_v20  ;;  %578 = vst.msk [vmem:[%s353_s17] sm:$0xff] %vm577_vm4, %v559_v21 }
 0x328   : > { %v601_v27 = vmul.f32 0.35355338, %v600_v25 }
 0x329   : > { %v640_v28 = vpop.permute.xlu1 %639 }
 0x32a   : > { %v642_v29 = vadd.f32 %v640_v28, %v629_v26  ;;  %620 = vst.msk [vmem:[%s353_s17] sm:$0xff] %vm619_vm5, %v601_v27 }
 0x32c   : > { %v643_v30 = vmul.f32 0.35355338, %v642_v29 }
 0x32e   : > { %662 = vst.msk [vmem:[%s353_s17] sm:$0xff] %vm661_vm6, %v643_v30 }
 0x32f   : > { %984 = shalt.err (!%p981_p3)
}
 0x330   : > { %s985_s14 = scalar_lea.hbm %s690_s16, 128  ;;  %s989_s22 = scalar_lea.hbm %s1435_s7, 512 }
 0x331   : > { %p986_p4 = scmp.ne.s32.totalorder %s690_s16, %s985_s14  ;;  %p990_p9 = scmp.lt.s32.totalorder %s690_s16, %s1435_s7 }
 0x332   : > { %p991_p10 = scmp.lt.s32.totalorder %s989_s22, %s985_s14 }
 0x333   : > { %p987_p7 = pnand %p986_p4, %p1202_p5 }
 0x334   : > { %p992_p11 = por %p991_p10, %p990_p9 }
 0x335   : > { %p988_p8 = pneg %p987_p7 }
 0x337   : > { %p993_p12 = pnand %p992_p11, %p988_p8 }
 0x339   : > { %996 = shalt.err (!%p993_p12)
}
 0x33a   : > { %900 = dma.vmem_to_hbm [thread:$0]  (%p1202_p5), %s693_s24, 128, %s690_s16, %s669_s26  }
 0x33b   : > { %s360_s0 = scalar_lea.vmem [#allocation4], %s1310_s21  ;;  %s673_s1 = sand.u32 1, %s1183_s13  }
 0x33c   : > { %s705_s2 = sshll.u32 %s360_s0, 4  ;;  %s367_s27 = scalar_lea.vmem [#allocation6], %s1310_s21  ;;  %s1354_s2 = int_to_ptr.vmem [resolvable:$true] %s705_s2 }
 0x33d   : > { %s718_s28 = sshll.u32 %s367_s27, 4  ;;  %s1352_s26 = scalar_lea.hbm %s1436_s8, %s1319_s25  ;;  %s1356_s28 = int_to_ptr.vmem [resolvable:$true] %s718_s28 }
 0x33e   : > { %s1362_s21 = scalar_lea.hbm %s1437_s9, %s1319_s25  ;;  %s1365_s14 = scalar_lea.sflag [#allocation5], %s673_s1 }
 0x33f   : > { %s997_s23 = scalar_lea.vmem %s1354_s2, 128  ;;  %s1110_s17 = smov [#allocation4]  }
 0x340   : > { %p998_p13 = scmp.ne.s32.totalorder %s1354_s2, %s997_s23  ;;  %s1001_s22 = sshll.u32 %s1110_s17, 4  ;;  %s1002_s22 = int_to_ptr.vmem [resolvable:$false] %s1001_s22 }
 0x341   : > { %p1004_p2 = scmp.lt.s32.totalorder %s1354_s2, %s1002_s22 }
 0x342   : > { %p999_p0 = pnand %p998_p13, %p1202_p5 }
 0x344   : > { %p1000_p1 = pneg %p999_p0 }
 0x376   : > { %v539_v23 = vpop.permute.xlu0 %538 }
 0x377   : > { %541 = vst.msk [vmem:[%s360_s0] sm:$0xff] %vm535_vm3, %v539_v23 }
 0x37a   : > { %v581_v31 = vpop.permute.xlu0 %580 }
 0x37b   : > { %583 = vst.msk [vmem:[%s360_s0] sm:$0xff] %vm577_vm4, %v581_v31 }
 0x382   : > { %v623_v32 = vpop.permute.xlu1 %622 }
 0x383   : > { %625 = vst.msk [vmem:[%s360_s0] sm:$0xff] %vm619_vm5, %v623_v32 }
 0x386   : > { %v500_v33 = vpop.permute.xlu1 %499 }
 0x387   : > { %502 = vst.msk [vmem:[%s367_s27] sm:$0xff] %vm383_vm0, %v500_v33  ;;  %s1003_s27 = scalar_lea.vmem %s1002_s22, 256 }
 0x388   : > { %p1005_p3 = scmp.lt.s32.totalorder %s1003_s27, %s997_s23 }
 0x38a   : > { %v665_v34 = vpop.permute.xlu0 %664  ;;  %p1006_p4 = por %p1005_p3, %p1004_p2 }
 0x38b   : > { %667 = vst.msk [vmem:[%s360_s0] sm:$0xff] %vm661_vm6, %v665_v34 }
 0x38c   : > { %p1007_p7 = pnand %p1006_p4, %p1000_p1 }
 0x38e   : > { %1010 = shalt.err (!%p1007_p7)
}
 0x38f   : > { %s1011_s25 = scalar_lea.hbm %s1352_s26, 128  ;;  %s1015_s24 = scalar_lea.hbm %s1436_s8, 512 }
 0x390   : > { %p1012_p8 = scmp.ne.s32.totalorder %s1352_s26, %s1011_s25  ;;  %p1016_p11 = scmp.lt.s32.totalorder %s1352_s26, %s1436_s8 }
 0x391   : > { %p1017_p12 = scmp.lt.s32.totalorder %s1015_s24, %s1011_s25 }
 0x392   : > { %p1013_p9 = pnand %p1012_p8, %p1202_p5 }
 0x393   : > { %p1018_p13 = por %p1017_p12, %p1016_p11 }
 0x394   : > { %p1014_p10 = pneg %p1013_p9 }
 0x396   : > { %p1019_p0 = pnand %p1018_p13, %p1014_p10 }
 0x398   : > { %1022 = shalt.err (!%p1019_p0)
}
 0x399   : > { %901 = dma.vmem_to_hbm [thread:$0]  (%p1202_p5), %s1354_s2, 128, %s1352_s26, %s1365_s14  }
 0x39a   : > { %s1023_s29 = scalar_lea.vmem %s1356_s28, 128  ;;  %s1111_s23 = smov [#allocation6]  }
 0x39b   : > { %p1024_p1 = scmp.ne.s32.totalorder %s1356_s28, %s1023_s29  ;;  %s1027_s17 = sshll.u32 %s1111_s23, 4  ;;  %s1028_s17 = int_to_ptr.vmem [resolvable:$false] %s1027_s17 }
 0x39c   : > { %s1029_s22 = scalar_lea.vmem %s1028_s17, 256  ;;  %p1030_p4 = scmp.lt.s32.totalorder %s1356_s28, %s1028_s17 }
 0x39d   : > { %p1025_p2 = pnand %p1024_p1, %p1202_p5  ;;  %p1031_p7 = scmp.lt.s32.totalorder %s1029_s22, %s1023_s29 }
 0x39f   : > { %p1026_p3 = pneg %p1025_p2  ;;  %p1032_p8 = por %p1031_p7, %p1030_p4 }
 0x3a1   : > { %p1033_p9 = pnand %p1032_p8, %p1026_p3 }
 0x3a3   : > { %1036 = shalt.err (!%p1033_p9)
}
 0x3a4   : > { %s1037_s27 = scalar_lea.hbm %s1362_s21, 128  ;;  %s1041_s25 = scalar_lea.hbm %s1437_s9, 512 }
 0x3a5   : > { %p1038_p10 = scmp.ne.s32.totalorder %s1362_s21, %s1037_s27  ;;  %p1042_p13 = scmp.lt.s32.totalorder %s1362_s21, %s1437_s9 }
 0x3a6   : > { %p1043_p0 = scmp.lt.s32.totalorder %s1041_s25, %s1037_s27 }
 0x3a7   : > { %p1039_p11 = pnand %p1038_p10, %p1202_p5 }
 0x3a8   : > { %p1044_p1 = por %p1043_p0, %p1042_p13 }
 0x3a9   : > { %p1040_p12 = pneg %p1039_p11 }
 0x3ab   : > { %p1045_p2 = pnand %p1044_p1, %p1040_p12 }
 0x3ad   : > { %1048 = shalt.err (!%p1045_p2)
}
 0x3ae   : > { %902 = dma.vmem_to_hbm [thread:$0]  (%p1202_p5), %s1356_s28, 128, %s1362_s21, %s1365_s14  }
 0x3af PF: > { %p916_p3 = scmp.ge.s32.totalorder %s1087_s12, 2  ;;  %s730_s24 = sand.u32 1, %s1075_s30  }
 0x3b0   : > { %s731_s16 = scalar_lea.sflag [#allocation3], %s730_s24 }
 0x3b1   : > { %p907_p4 = pnand %p916_p3, %p1206_p6 }
 0x3b3   : > { %p908_p7 = pneg %p907_p4 }
 0x3b5   : > { %1066 = dma.done.wait (%p908_p7), %s731_s16, 128  }
 0x3b6   : > { %1068 = vsyncadd (%p908_p7), %s731_s16, 4294967168  ;;  %s1449_s13 = sadd.s32 4294967294, %s1087_s12  }
 0x3b7   : > { %s739_s29 = sand.u32 1, %s1449_s13  }
 0x3b8   : > { %s740_s19 = scalar_lea.sflag [#allocation5], %s739_s29 }
 0x3b9   : > { %1070 = dma.done.wait (%p908_p7), %s740_s19, 256  }
 0x3ba   : > { %1072 = vsyncadd (%p908_p7), %s740_s19, 4294967040  ;;  %p23_p5 = scmp.ge.s32.totalorder %s1187_s15, 6   ;;  %s1450_s30 = smov %s1079_s10 }
 0x3bb   : > { %s1451_s10 = smov %s1083_s11  ;;  %s1452_s11 = smov %s1200_s18 }
 0x3bc   : > { %s1453_s12 = smov %s1187_s15  ;;  %25 = sbr.rel (!%p23_p5) target bundleno = 9 (0x9), region = 121 }
 0x3c1   :  { %754 = vsyncpa [#allocation3], 1 }
 0x3c2   :  { %756 = vsyncpa [#allocation3 + $0x1], 1 }
 0x3c3   :  { %757 = vsyncpa [#allocation5], 1 }
 0x3c4   :  { %759 = vsyncpa [#allocation5 + $0x1], 1 }

</bundles_post_ra>
